<compile_context>
chip_gen: v5e
topology: v5e:2x2
jax: 0.10.0
libtpu: 0.0.40
codegen_flags: <defaults>
</compile_context>

<pallas_src>
import math

import jax
import jax.numpy as jnp
from jax.experimental import pallas as pl
from jax.experimental.pallas import tpu as pltpu


def pe_add_kernel(x_ref, pe_ref, o_ref):
    """x_ref / o_ref: (tile_S, nb*D); pe_ref: (tile_S, D).

    Static Python loop over D-wide lane slices: each slice gets `x + pe` with
    no replicated-pe temporary.  For d_model a multiple of 128 every slice
    load/store is lane-dense and unmasked.
    """
    d = pe_ref.shape[1]
    nb = x_ref.shape[1] // d
    pe = pe_ref[...]
    for j in range(nb):
        sl = slice(j * d, (j + 1) * d)          # static slice -> zero-cost view
        o_ref[:, sl] = (x_ref[:, sl] + pe).astype(o_ref.dtype)


def _round_up(n, m):
    return (n + m - 1) // m * m


def _pick_tiles(S, B, D, x_itemsize, *, target_bytes=4 << 20):
    """Choose (seq_block, batch_block).

    seq_block is a multiple of 8 (or the full extent S when S <= 8) and sized
    so the x tile is ~target_bytes.  batch_block < B (lane tiling) is used only
    when even an 8-row full-width tile exceeds the target and D is 128-aligned.
    At least 2 grid steps are produced when there is enough work (v7x megacore).
    """
    full_row_bytes = B * D * x_itemsize

    # Lane tiling for very large B*D rows.
    if 8 * full_row_bytes > target_bytes and D % 128 == 0 and B > 1:
        batch_block = max(1, target_bytes // (8 * D * x_itemsize))
        batch_block = min(int(batch_block), B)
        seq_block = 8 if S > 8 else S
        return seq_block, batch_block

    batch_block = B
    if S <= 8:
        return S, batch_block

    seq_block = max(8, (target_bytes // full_row_bytes) // 8 * 8)
    seq_block = int(min(seq_block, _round_up(S, 8)))
    # Guarantee >=2 grid steps when the array is big enough (keeps both v7x
    # TensorCores busy and lets the DMA pipeline overlap).
    if seq_block >= S and S >= 16:
        seq_block = max(8, (S // 2) // 8 * 8)
    return seq_block, batch_block


def positional_encoding_add(x, pe_table, *, seq_block=None, batch_block=None):
    """x: (seq_len, batch, d_model); pe_table: (max_len, d_model) or (max_len, 1, d_model).

    Returns x + pe_table[:seq_len] broadcast over batch (the module's forward).
    """
    S, B, D = x.shape
    assert pe_table.shape[0] >= S and pe_table.shape[-1] == D

    # Stream pe in the input dtype for 16-bit inputs; keep f32 for f32 inputs.
    itemsize = jnp.dtype(x.dtype).itemsize
    pe_dtype = x.dtype if itemsize < 4 else jnp.float32
    pe = pe_table[:S].reshape(S, D).astype(pe_dtype)

    # Lane-dense 2D view of x (row-major contiguous -> free reshape).
    x2d = x.reshape(S, B * D)

    auto_sb, auto_bb = _pick_tiles(S, B, D, itemsize)
    if seq_block is None:
        seq_block = auto_sb
    if batch_block is None:
        batch_block = auto_bb
    batch_block = min(batch_block, B)

    lane_block = batch_block * D
    grid_s = pl.cdiv(S, seq_block)
    grid_b = pl.cdiv(B, batch_block)
    if grid_b > 1:
        # Partial-width blocks must stay 128-aligned on the lane axis.
        assert lane_block % 128 == 0, "lane tiling requires d_model % 128 == 0"

    # VMEM budget: double-buffered x + out + pe tiles plus headroom.
    tile_bytes = seq_block * lane_block * itemsize
    pe_bytes = seq_block * D * jnp.dtype(pe_dtype).itemsize
    vmem_limit = int(min(max(2 * (2 * tile_bytes + pe_bytes) + (4 << 20), 32 << 20),
                         64 << 20))

    if grid_b == 1:
        grid = (grid_s,)
        x_spec = pl.BlockSpec((seq_block, lane_block), lambda i: (i, 0))
        pe_spec = pl.BlockSpec((seq_block, D), lambda i: (i, 0))
        o_spec = pl.BlockSpec((seq_block, lane_block), lambda i: (i, 0))
        semantics = ("parallel",)
    else:
        grid = (grid_s, grid_b)
        x_spec = pl.BlockSpec((seq_block, lane_block), lambda i, j: (i, j))
        pe_spec = pl.BlockSpec((seq_block, D), lambda i, j: (i, 0))
        o_spec = pl.BlockSpec((seq_block, lane_block), lambda i, j: (i, j))
        semantics = ("parallel", "parallel")

    out2d = pl.pallas_call(
        pe_add_kernel,
        out_shape=jax.ShapeDtypeStruct((S, B * D), x.dtype),
        grid_spec=pltpu.PrefetchScalarGridSpec(
            num_scalar_prefetch=0,
            grid=grid,
            in_specs=[x_spec, pe_spec],
            out_specs=o_spec,
        ),
        compiler_params=pltpu.CompilerParams(
            dimension_semantics=semantics,
            vmem_limit_bytes=vmem_limit,
        ),
    )(x2d, pe)
    return out2d.reshape(S, B, D)


class PositionalEncoding:
    """JAX/Pallas mirror of the PyTorch module: pe buffer built at init."""

    def __init__(self, d_model, max_len=5000):
        # The PyTorch slicing pattern (pe[:, 0::2] / pe[:, 1::2]) requires even d_model.
        assert d_model % 2 == 0, "d_model must be even (as in the PyTorch module)"
        position = jnp.arange(max_len, dtype=jnp.float32)[:, None]            # (L, 1)
        div_term = jnp.exp(
            jnp.arange(0, d_model, 2, dtype=jnp.float32)
            * (-math.log(10000.0) / d_model)
        )                                                                      # (D/2,)
        pe = jnp.zeros((max_len, d_model), dtype=jnp.float32)
        pe = pe.at[:, 0::2].set(jnp.sin(position * div_term))
        pe = pe.at[:, 1::2].set(jnp.cos(position * div_term))
        self.pe = pe                                                           # (max_len, D)

    def __call__(self, x, *, seq_block=None, batch_block=None):
        return positional_encoding_add(x, self.pe,
                                       seq_block=seq_block, batch_block=batch_block)


def positional_encoding_ref(x):
    """Pure-JAX reference mirroring the PyTorch module exactly (f32)."""
    S, B, D = x.shape
    position = jnp.arange(S, dtype=jnp.float32)[:, None]
    div_term = jnp.exp(
        jnp.arange(0, D, 2, dtype=jnp.float32) * (-math.log(10000.0) / D)
    )
    pe = jnp.zeros((S, D), dtype=jnp.float32)
    pe = pe.at[:, 0::2].set(jnp.sin(position * div_term))
    pe = pe.at[:, 1::2].set(jnp.cos(position * div_term))
    return x + pe[:, None, :]


if __name__ == "__main__":
    key = jax.random.PRNGKey(0)
    seq_len, batch, d_model = 32, 2, 128
    x = jax.random.normal(key, (seq_len, batch, d_model), dtype=jnp.float32)

    module = PositionalEncoding(d_model)           # max_len=5000, PyTorch default
    ref = positional_encoding_ref(x)

    # Auto-chosen tiles (2 grid steps at this shape).
    out = jax.block_until_ready(module(x))
    assert out.shape == (seq_len, batch, d_model)
    assert jnp.allclose(out, ref, atol=1e-6, rtol=1e-6), "mismatch (auto tiles)"

    # Explicit multi-step grid.
    out_tiled = jax.block_until_ready(module(x, seq_block=8))
    assert jnp.allclose(out_tiled, ref, atol=1e-6, rtol=1e-6), "mismatch (seq tiled)"

    # Lane-tiled (2D grid) path: one batch slice per lane block.
    out_lane = jax.block_until_ready(module(x, seq_block=8, batch_block=1))
    assert jnp.allclose(out_lane, ref, atol=1e-6, rtol=1e-6), "mismatch (lane tiled)"

    # Ragged sequence length (cdiv grid, masked last block).
    x_rag = jax.random.normal(key, (20, batch, d_model), dtype=jnp.float32)
    out_rag = jax.block_until_ready(module(x_rag, seq_block=8))
    assert jnp.allclose(out_rag, positional_encoding_ref(x_rag),
                        atol=1e-6, rtol=1e-6), "mismatch (ragged S)"

    # bf16 input: pe streamed and added in bf16 (output stays bf16; torch would
    # promote to f32 against its f32 buffer -- documented divergence).
    x_bf16 = x.astype(jnp.bfloat16)
    out_bf16 = jax.block_until_ready(module(x_bf16))
    ref_bf16 = (x_bf16.astype(jnp.float32)
                + module.pe[:seq_len][:, None, :]).astype(jnp.bfloat16)
    assert jnp.allclose(out_bf16.astype(jnp.float32), ref_bf16.astype(jnp.float32),
                        atol=3e-2, rtol=3e-2), "mismatch (bf16)"

    print("KERNEL_OK")
</pallas_src>

<mosaic_0001>
module attributes {stable_mosaic.version = 11 : i64} {
  func.func @pe_add_kernel(%arg0: i32, %arg1: memref<16x256xf32, #tpu.memory_space<vmem>>, %arg2: memref<16x128xf32, #tpu.memory_space<vmem>>, %arg3: memref<16x256xf32, #tpu.memory_space<vmem>>) attributes {dimension_semantics = [#tpu.dimension_semantics<parallel>], iteration_bounds = array<i64: 2>, scalar_prefetch = 0 : i64, scratch_operands = 0 : i64, tpu.core_type = #tpu.core_type<tc>, window_params = [{transform_indices = @transform_0, window_bounds = array<i64: 16, 256>}, {transform_indices = @transform_1, window_bounds = array<i64: 16, 128>}, {transform_indices = @transform_2, window_bounds = array<i64: 16, 256>}]} {
    %c0 = arith.constant 0 : index
    %c0_0 = arith.constant 0 : index
    %0 = vector.load %arg2[%c0, %c0_0] : memref<16x128xf32, #tpu.memory_space<vmem>>, vector<16x128xf32>
    %c0_1 = arith.constant 0 : index
    %c0_2 = arith.constant 0 : index
    %1 = vector.load %arg1[%c0_1, %c0_2] : memref<16x256xf32, #tpu.memory_space<vmem>>, vector<16x128xf32>
    %2 = arith.addf %1, %0 : vector<16x128xf32>
    %c0_3 = arith.constant 0 : index
    %c0_4 = arith.constant 0 : index
    %3 = vector.load %arg3[%c0_3, %c0_4] : memref<16x256xf32, #tpu.memory_space<vmem>>, vector<16x128xf32>
    tpu.vector_store %arg3[%c0_3, %c0_4], %2 {strides = array<i32>} : memref<16x256xf32, #tpu.memory_space<vmem>>, vector<16x128xf32>,
    %c0_5 = arith.constant 0 : index
    %c128 = arith.constant 128 : index
    %4 = vector.load %arg1[%c0_5, %c128] : memref<16x256xf32, #tpu.memory_space<vmem>>, vector<16x128xf32>
    %5 = arith.addf %4, %0 : vector<16x128xf32>
    %c0_6 = arith.constant 0 : index
    %c128_7 = arith.constant 128 : index
    %6 = vector.load %arg3[%c0_6, %c128_7] : memref<16x256xf32, #tpu.memory_space<vmem>>, vector<16x128xf32>
    tpu.vector_store %arg3[%c0_6, %c128_7], %5 {strides = array<i32>} : memref<16x256xf32, #tpu.memory_space<vmem>>, vector<16x128xf32>,
    return
  }
  func.func @transform_0(%arg0: i32) -> (i32, i32) {
    %c0_i32 = arith.constant 0 : i32
    %c0_i32_0 = arith.constant 0 : i32
    return %arg0, %c0_i32 : i32, i32
  }
  func.func @transform_1(%arg0: i32) -> (i32, i32) {
    %c0_i32 = arith.constant 0 : i32
    %c0_i32_0 = arith.constant 0 : i32
    return %arg0, %c0_i32 : i32, i32
  }
  func.func @transform_2(%arg0: i32) -> (i32, i32) {
    %c0_i32 = arith.constant 0 : i32
    %c0_i32_0 = arith.constant 0 : i32
    return %arg0, %c0_i32 : i32, i32
  }
}

</mosaic_0001>

<bundles_post_ra>
// kernel: tpu_custom_call.1
= control target key start
LH: loop header
LB: loop body
LE: loop exit
PB: predicated region body
PF: predicated region fallthrough
CT: control target
= control target key end

     0   :  { %7 = vsyncpa [#allocation3], 0  ;;  %s735_s0 = inlined_call_operand.hbm [shape: f32[32,256], index: 0, kind: input, shape index: {}]   ;;  %s736_s1 = inlined_call_operand.hbm [shape: f32[32,128], index: 1, kind: input, shape index: {}]   ;;  %s737_s2 = inlined_call_operand.hbm [shape: f32[32,256], index: 2, kind: output, shape index: {}]  }
   0x1   :  { %9 = vsyncpa [#allocation3 + $0x1], 0 }
   0x2   :  { %10 = vsyncpa [#allocation6], 0 }
   0x3   :  { %12 = vsyncpa [#allocation6 + $0x1], 0 }
   0x4   :  { %13 = vsyncpa [#allocation4], 0 }
   0x5   :  { %15 = vsyncpa [#allocation4 + $0x1], 0  ;;  %s572_s9 = smov 0   ;;  %s574_s10 = smov 0  }
   0x6   :  { %s576_s11 = smov 0   ;;  %s578_s12 = smov 0  }
   0x7 LB: > { %s593_s13 = sadd.s32 4294967295, %s549_s12   ;;  %s337_s14 = sadd.s32 4294967294, %s549_s12   ;;  %s549_s12 = sphi %s578_s12, %s748_s12   ;;  %s545_s11 = sphi %s576_s11, %s747_s11   ;;  %s541_s10 = sphi %s574_s10, %s746_s10   ;;  %s537_s9 = sphi %s572_s9, %s745_s9  }
   0x8   : > { %s597_s15 = sadd.s32 1, %s549_s12   ;;  %s28_s16 = sadd.s32 1, %s545_s11 }
   0x9   : > { %s25_s17 = ssub.s32 %s549_s12, %s597_s15  ;;  %p35_p0 = scmp.ne.s32.totalorder %s545_s11, %s541_s10 }
   0xa   : > { %p26_p1 = scmp.eq.s32.totalorder %s25_s17, 0  ;;  %p36_p2 = scmp.eq.s32.totalorder %s549_s12, 0 }
   0xb   : > { %p41_p3 = scmp.ne.s32.totalorder %s541_s10, %s537_s9  ;;  %p42_p4 = scmp.eq.s32.totalorder %s593_s13, 0 }
   0xc   : > { %s609_s18 = scalar_select %p26_p1, %s545_s11, %s28_s16  }
   0xd   : > { %p611_p5 = por %p36_p2, %p35_p0  ;;  %p615_p6 = por %p42_p4, %p41_p3 }
   0xe   : > { %p91_p7 = scmp.eq.s32.totalorder %s593_s13, 1  ;;  %p97_p8 = scmp.eq.s32.totalorder %s337_s14, 1 }
   0xf   : > { %p379_p10 = scmp.lt.s32.totalorder %s549_s12, 2  ;;  %s631_s23 = sand.u32 1, %s545_s11  }
  0x10   : > { %p622_p11 = por %p91_p7, %p35_p0  ;;  %p626_p12 = por %p97_p8, %p41_p3 }
  0x11   : > { %s358_s24 = sshll.u32 %s549_s12, 5  ;;  %s340_s25 = sshll.u32 %s631_s23, 5 }
  0x12   : > { %s127_s28 = scalar_lea.hbm %s735_s0, %s358_s24  ;;  %s121_s30 = scalar_lea.vmem [#allocation2], %s340_s25 }
  0x13   : > { %s128_s29 = sshll.u32 %s127_s28, 4  ;;  %s130_s3 = sshll.u32 %s121_s30, 4  ;;  %s129_s29 = int_to_ptr.hbm [resolvable:$true] %s128_s29  ;;  %s131_s3 = int_to_ptr.vmem [resolvable:$true] %s130_s3 }
  0x14   : > { %p640_p13 = pnand %p379_p10, %p611_p5  ;;  %p347_p0 = scmp.ge.s32.totalorder %s549_s12, 1 }
  0x15   : > { %p160_p1 = scmp.lt.s32.totalorder %s549_s12, 3  ;;  %s118_s5 = scalar_lea.sflag [#allocation3], %s631_s23 }
  0x16   : > { %s419_s6 = sshra.s32 %s129_s29, 4  ;;  %p423_p3 = pneg %p640_p13  ;;  %s420_s6 = int_to_ptr.hbm [resolvable:$true] %s419_s6 }
  0x17   : > { %s421_s7 = scalar_lea.hbm %s420_s6, 32  ;;  %s426_s16 = scalar_lea.hbm %s735_s0, 64 }
  0x18   : > { %p422_p2 = scmp.ne.s32.totalorder %s420_s6, %s421_s7  ;;  %p427_p5 = scmp.lt.s32.totalorder %s420_s6, %s735_s0 }
  0x19   : > { %p428_p8 = scmp.lt.s32.totalorder %s426_s16, %s421_s7 }
  0x1a   : > { %p424_p4 = pnand %p423_p3, %p422_p2 }
  0x1b   : > { %p429_p10 = por %p428_p8, %p427_p5 }
  0x1c   : > { %p425_p7 = pneg %p424_p4 }
  0x1e   : > { %p430_p9 = pnand %p429_p10, %p425_p7 }
  0x20   : > { %433 = shalt.err (!%p430_p9)
}
  0x21   : > { %s551_s24 = smov 256   ;;  %s552_s25 = smov 16  }
  0x22   : > { %371 = dma.hbm_to_vmem [thread:$0]  (!%p640_p13), %s129_s29, 512, %s131_s3, %s118_s5, %s551_s24, %s551_s24, %s552_s25  }
  0x23   : > { %p664_p2 = pnand %p347_p0, %p160_p1  ;;  %s344_s27 = sshll.u32 %s631_s23, 4 }
  0x24   : > { %s359_s28 = sshll.u32 %s549_s12, 4  ;;  %s144_s14 = scalar_lea.vmem [#allocation5], %s344_s27 }
  0x25   : > { %s149_s7 = scalar_lea.hbm %s736_s1, %s359_s28  ;;  %s152_s16 = sshll.u32 %s144_s14, 4  ;;  %s153_s16 = int_to_ptr.vmem [resolvable:$true] %s152_s16 }
  0x26   : > { %s150_s8 = sshll.u32 %s149_s7, 4  ;;  %s141_s17 = scalar_lea.sflag [#allocation6], %s631_s23  ;;  %s151_s8 = int_to_ptr.hbm [resolvable:$true] %s150_s8 }
  0x27   : > { %s449_s19 = sshra.s32 %s151_s8, 4  ;;  %s456_s24 = scalar_lea.hbm %s736_s1, 32  ;;  %s450_s19 = int_to_ptr.hbm [resolvable:$true] %s449_s19 }
  0x28   : > { %s451_s29 = scalar_lea.hbm %s450_s19, 16  ;;  %p457_p4 = scmp.lt.s32.totalorder %s450_s19, %s736_s1 }
  0x29   : > { %p452_p9 = scmp.ne.s32.totalorder %s450_s19, %s451_s29  ;;  %p458_p7 = scmp.lt.s32.totalorder %s456_s24, %s451_s29 }
  0x2b   : > { %p454_p0 = pnand %p452_p9, %p423_p3  ;;  %p459_p5 = por %p458_p7, %p457_p4 }
  0x2d   : > { %p455_p1 = pneg %p454_p0 }
  0x2f   : > { %p460_p8 = pnand %p459_p5, %p455_p1 }
  0x31   : > { %463 = shalt.err (!%p460_p8)
}
  0x32   : > { %s553_s23 = smov 128   ;;  %s554_s27 = smov 8  }
  0x33   : > { %374 = dma.hbm_to_vmem [thread:$0]  (!%p640_p13), %s151_s8, 256, %s153_s16, %s141_s17, %s553_s23, %s553_s23, %s554_s27  }
  0x34   : > { %164 = sbr.rel (%p664_p2) target bundleno = 77 (0x4d), region = 28  ;;  %s688_s30 = sand.u32 (!%p664_p2), 1, %s541_s10  }
  0x35   : > { %s348_s6 = sshll.u32 (!%p664_p2), %s688_s30, 5  ;;  %s167_s7 = scalar_lea.sflag (!%p664_p2), [#allocation3], %s688_s30 }
  0x36   : > { %s170_s14 = scalar_lea.vmem (!%p664_p2), [#allocation2], %s348_s6 }
  0x39   : > { %524 = dma.done.wait (%p615_p6), %s167_s7, 512  }
  0x3a   : > { %526 = vsyncadd (%p615_p6), %s167_s7, 4294966784  ;;  %s349_s4 = sshll.u32 %s688_s30, 4  ;;  %s177_s26 = scalar_lea.sflag [#allocation6], %s688_s30 }
  0x3b   : > { %s180_s8 = scalar_lea.vmem [#allocation5], %s349_s4 }
  0x3c   : > { %528 = dma.done.wait (%p615_p6), %s177_s26, 256  }
  0x3d   : > { %530 = vsyncadd (%p615_p6), %s177_s26, 4294967040  ;;  %s361_s16 = sshll.u32 %s593_s13, 5  ;;  %v210_v0 = vld [vmem:[%s180_s8] sm:$0xff]  ;;  %s206_s3 = scalar_lea.vmem [#allocation7], %s348_s6  ;;  %v211_v2 = vld [vmem:[%s180_s8 + $0x8] sm:$0xff] }
  0x3e   : > { %s237_s29 = scalar_lea.hbm %s737_s2, %s361_s16  ;;  %v212_v1 = vld [vmem:[%s170_s14] sm:$0xff]  ;;  %s238_s5 = sshll.u32 %s206_s3, 4  ;;  %v213_v4 = vld [vmem:[%s170_s14 + $0x10] sm:$0xff]  ;;  %v218_v5 = vld [vmem:[%s170_s14 + $0x8] sm:$0xff]  ;;  %s239_s5 = int_to_ptr.vmem [resolvable:$true] %s238_s5 }
  0x3f   : > { %v214_v3 = vadd.f32 %v212_v1, %v210_v0  ;;  %v219_v6 = vld [vmem:[%s170_s14 + $0x18] sm:$0xff]  ;;  %s240_s24 = sshll.u32 %s237_s29, 4  ;;  %v215_v7 = vadd.f32 %v213_v4, %v211_v2  ;;  %v220_v8 = vadd.f32 %v218_v5, %v210_v0  ;;  %s225_s13 = scalar_lea.sflag [#allocation4], %s688_s30  ;;  %s241_s24 = int_to_ptr.hbm [resolvable:$true] %s240_s24 }
  0x40   : > { %v221_v9 = vadd.f32 %v219_v6, %v211_v2  ;;  %s493_s20 = sshra.s32 %s241_s24, 4  ;;  %s499_s27 = scalar_lea.hbm %s737_s2, 64  ;;  %s494_s20 = int_to_ptr.hbm [resolvable:$true] %s493_s20 }
  0x41   : > { %216 = vst [vmem:[%s206_s3] sm:$0xff] %v214_v3  ;;  %s495_s25 = scalar_lea.hbm %s494_s20, 32  ;;  %p500_p10 = scmp.lt.s32.totalorder %s494_s20, %s737_s2 }
  0x42   : > { %217 = vst [vmem:[%s206_s3 + $0x10] sm:$0xff] %v215_v7  ;;  %p496_p6 = scmp.ne.s32.totalorder %s494_s20, %s495_s25  ;;  %p501_p2 = scmp.lt.s32.totalorder %s499_s27, %s495_s25 }
  0x43   : > { %222 = vst [vmem:[%s206_s3 + $0x8] sm:$0xff] %v220_v8 }
  0x44   : > { %223 = vst [vmem:[%s206_s3 + $0x18] sm:$0xff] %v221_v9  ;;  %p497_p13 = pnand %p496_p6, %p622_p11  ;;  %p502_p9 = por %p501_p2, %p500_p10 }
  0x46   : > { %p498_p3 = pneg %p497_p13 }
  0x48   : > { %p503_p0 = pnand %p502_p9, %p498_p3 }
  0x4a   : > { %506 = shalt.err (!%p503_p0)
}
  0x4b   : > { %s555_s30 = smov 256   ;;  %s556_s14 = smov 16  }
  0x4c   : > { %366 = dma.vmem_to_hbm [thread:$0]  (%p622_p11), %s239_s5, 512, %s241_s24, %s225_s13, %s555_s30, %s555_s30, %s556_s14  }
  0x4d PF: > { %s255_s4 = sand.u32 1, %s537_s9   ;;  %p744_p1 = scmp.ge.s32.totalorder %s549_s12, 2 }
  0x4e   : > { %s256_s26 = scalar_lea.sflag [#allocation4], %s255_s4 }
  0x4f   : > { %p376_p4 = pnand %p744_p1, %p626_p12 }
  0x51   : > { %p377_p7 = pneg %p376_p4 }
  0x53   : > { %532 = dma.done.wait (%p377_p7), %s256_s26, 512  }
  0x54   : > { %534 = vsyncadd (%p377_p7), %s256_s26, 4294966784  ;;  %p18_p5 = scmp.ge.s32.totalorder %s597_s15, 4   ;;  %s745_s9 = smov %s541_s10 }
  0x55   : > { %s746_s10 = smov %s545_s11  ;;  %s747_s11 = smov %s609_s18 }
  0x56   : > { %s748_s12 = smov %s597_s15  ;;  %20 = sbr.rel (!%p18_p5) target bundleno = 7 (0x7), region = 86 }
  0x5b   :  { %262 = vsyncpa [#allocation3], 1 }
  0x5c   :  { %264 = vsyncpa [#allocation3 + $0x1], 1 }
  0x5d   :  { %265 = vsyncpa [#allocation6], 1 }
  0x5e   :  { %267 = vsyncpa [#allocation6 + $0x1], 1 }
  0x5f   :  { %268 = vsyncpa [#allocation4], 1 }
  0x60   :  { %270 = vsyncpa [#allocation4 + $0x1], 1 }

</bundles_post_ra>
